<compile_context>
chip_gen: v6e
topology: v6e:2x2x1
jax: 0.10.0
libtpu: 0.0.40
codegen_flags: <defaults>
</compile_context>

<pallas_src>
import functools

import jax
import jax.numpy as jnp
from jax.experimental import pallas as pl
from jax.experimental.pallas import tpu as pltpu


def _gelu(x):
    # tanh-approximated GELU (EUP-friendly inside the kernel).
    c = jnp.float32(0.7978845608028654)  # sqrt(2/pi)
    return 0.5 * x * (1.0 + jnp.tanh(c * (x + 0.044715 * x * x * x)))


def _reversible_kernel(x_ref, w_ref, b_ref, o_ref, x1_sc, x2_sc):
    d = pl.program_id(1)
    last = pl.num_programs(1) - 1

    @pl.when(d == 0)
    def _():
        # cat([x, x], dim=-1) then chunk -> x1 = x2 = x (carries kept in f32)
        xf = x_ref[...].astype(jnp.float32)
        x1_sc[...] = xf
        x2_sc[...] = xf

    # Load each carry exactly once per step.
    x1 = x1_sc[...]
    x2 = x2_sc[...]

    wf = w_ref[0]                       # (D, D) bf16
    wg = w_ref[1]                       # (D, D) bf16
    bf = b_ref[0:1, :]                  # (1, D) f32
    bg = b_ref[1:2, :]                  # (1, D) f32

    # f block: y1 = x1 + gelu(x2 @ Wf + bf)   (bf16 MXU operands, f32 accumulation)
    y1 = x1 + _gelu(
        jnp.dot(x2.astype(jnp.bfloat16), wf, preferred_element_type=jnp.float32) + bf
    )

    # g block: y2 = x2 + gelu(y1 @ Wg + bg)
    y2 = x2 + _gelu(
        jnp.dot(y1.astype(jnp.bfloat16), wg, preferred_element_type=jnp.float32) + bg
    )

    # Only carry forward if there is another depth step for this row tile.
    @pl.when(d != last)
    def _():
        x1_sc[...] = y1
        x2_sc[...] = y2

    @pl.when(d == last)
    def _():
        # stack(chunk(cat([y1, y2], -1), 2, -1)).sum(0) == y1 + y2
        o_ref[...] = (y1 + y2).astype(o_ref.dtype)


def _pick_row_tile(M, D, out_itemsize, target, vmem_budget_bytes):
    """Largest divisor of M that is a multiple of 8 and fits target + VMEM budget."""
    # Per-row VMEM: x input (2 bufs, f32) + output (2 bufs) + 2 f32 carry scratch tiles.
    per_row = 2 * D * 4 + 2 * D * out_itemsize + 2 * D * 4
    # Fixed VMEM: fused weights (2 bufs, bf16) + fused biases (2 bufs, f32).
    fixed = 2 * (2 * D * D * 2) + 2 * (2 * D * 4)
    max_rows = max(8, (vmem_budget_bytes - fixed) // max(per_row, 1))
    target = int(min(target, max_rows))
    if M <= target:
        return M
    for cand in range(min(target, M), 0, -1):
        if M % cand == 0 and cand % 8 == 0:
            return cand
    return M


@functools.partial(jax.jit, static_argnames=("tm",))
def reversible_sequence(x, wf, bf, wg, bg, *, tm=1024):
    """x: (B, N, D); wf/wg: (depth, D, D); bf/bg: (depth, 1, D)."""
    B, N, D = x.shape
    depth = wf.shape[0]
    M = B * N
    x2d = x.reshape(M, D)

    TM = _pick_row_tile(M, D, x.dtype.itemsize, tm, vmem_budget_bytes=40 * 1024 * 1024)
    num_row_tiles = M // TM

    # bf16 weights halve the per-depth weight DMA and feed the MXU directly; biases stay f32.
    w_fused = jnp.stack(
        [wf.astype(jnp.bfloat16), wg.astype(jnp.bfloat16)], axis=1
    )  # (depth, 2, D, D)
    b_fused = jnp.concatenate(
        [bf.astype(jnp.float32), bg.astype(jnp.float32)], axis=1
    )  # (depth, 2, D)

    out2d = pl.pallas_call(
        _reversible_kernel,
        out_shape=jax.ShapeDtypeStruct((M, D), x.dtype),
        grid_spec=pltpu.PrefetchScalarGridSpec(
            num_scalar_prefetch=0,
            grid=(num_row_tiles, depth),
            in_specs=[
                pl.BlockSpec((TM, D), lambda i, d: (i, 0)),             # x row tile
                pl.BlockSpec((None, 2, D, D), lambda i, d: (d, 0, 0, 0)),  # [Wf[d]; Wg[d]] bf16
                pl.BlockSpec((None, 2, D), lambda i, d: (d, 0, 0)),        # [bf[d]; bg[d]] f32
            ],
            out_specs=pl.BlockSpec((TM, D), lambda i, d: (i, 0)),
            scratch_shapes=[
                pltpu.VMEM((TM, D), jnp.float32),  # x1 carry
                pltpu.VMEM((TM, D), jnp.float32),  # x2 carry
            ],
        ),
        compiler_params=pltpu.CompilerParams(
            dimension_semantics=("parallel", "arbitrary"),
            vmem_limit_bytes=48 * 1024 * 1024,
        ),
    )(x2d, w_fused, b_fused)

    return out2d.reshape(B, N, D)


def reversible_sequence_ref(x, wf, bf, wg, bg):
    """Pure-JAX reference matching the PyTorch module semantics (same bf16 matmul as kernel)."""
    depth = wf.shape[0]
    x1 = x.astype(jnp.float32)
    x2 = x.astype(jnp.float32)
    wf16 = wf.astype(jnp.bfloat16)
    wg16 = wg.astype(jnp.bfloat16)
    for d in range(depth):
        f_out = _gelu(
            jnp.dot(x2.astype(jnp.bfloat16), wf16[d], preferred_element_type=jnp.float32)
            + bf[d].astype(jnp.float32)
        )
        y1 = x1 + f_out
        g_out = _gelu(
            jnp.dot(y1.astype(jnp.bfloat16), wg16[d], preferred_element_type=jnp.float32)
            + bg[d].astype(jnp.float32)
        )
        y2 = x2 + g_out
        x1, x2 = y1, y2
    return (x1 + x2).astype(x.dtype)


if __name__ == "__main__":
    B, N, D = 2, 8, 32
    depth = 2

    key = jax.random.PRNGKey(0)
    kx, kwf, kbf, kwg, kbg = jax.random.split(key, 5)

    x = jax.random.normal(kx, (B, N, D), dtype=jnp.float32)
    scale = 1.0 / jnp.sqrt(jnp.float32(D))
    wf = jax.random.normal(kwf, (depth, D, D), dtype=jnp.float32) * scale
    bf = jax.random.normal(kbf, (depth, 1, D), dtype=jnp.float32) * 0.01
    wg = jax.random.normal(kwg, (depth, D, D), dtype=jnp.float32) * scale
    bg = jax.random.normal(kbg, (depth, 1, D), dtype=jnp.float32) * 0.01

    # tm=8 so the small demo exercises multiple row tiles (2 row tiles x 2 depths grid).
    out = reversible_sequence(x, wf, bf, wg, bg, tm=8)
    out = jax.block_until_ready(out)

    ref = reversible_sequence_ref(x, wf, bf, wg, bg)
    assert out.shape == (B, N, D), out.shape
    assert jnp.allclose(out, ref, atol=2e-2, rtol=2e-2), (
        float(jnp.max(jnp.abs(out - ref)))
    )

    print("KERNEL_OK")
</pallas_src>

<mosaic_0001>
module attributes {stable_mosaic.version = 11 : i64} {
  func.func @_reversible_kernel(%arg0: i32, %arg1: i32, %arg2: memref<8x32xf32, #tpu.memory_space<vmem>>, %arg3: memref<1x2x32x32xbf16, #tpu.memory_space<vmem>>, %arg4: memref<1x2x32xf32, #tpu.memory_space<vmem>>, %arg5: memref<8x32xf32, #tpu.memory_space<vmem>>, %arg6: memref<8x32xf32, #tpu.memory_space<vmem>>, %arg7: memref<8x32xf32, #tpu.memory_space<vmem>>) attributes {dimension_semantics = [#tpu.dimension_semantics<parallel>, #tpu.dimension_semantics<arbitrary>], iteration_bounds = array<i64: 2, 2>, scalar_prefetch = 0 : i64, scratch_operands = 2 : i64, tpu.core_type = #tpu.core_type<tc>, window_params = [{transform_indices = @transform_0, window_bounds = array<i64: 8, 32>}, {transform_indices = @transform_1, window_bounds = array<i64: 1, 2, 32, 32>}, {transform_indices = @transform_2, window_bounds = array<i64: 1, 2, 32>}, {transform_indices = @transform_3, window_bounds = array<i64: 8, 32>}]} {
    %c0_i32 = arith.constant 0 : i32
    %0 = arith.cmpi eq, %arg1, %c0_i32 : i32
    %1 = arith.extui %0 : i1 to i32
    %c0_i32_0 = arith.constant 0 : i32
    %2 = arith.cmpi ne, %1, %c0_i32_0 : i32
    scf.if %2 {
      %c0_29 = arith.constant 0 : index
      %c0_30 = arith.constant 0 : index
      %55 = vector.load %arg2[%c0_29, %c0_30] : memref<8x32xf32, #tpu.memory_space<vmem>>, vector<8x32xf32>
      %c0_31 = arith.constant 0 : index
      %c0_32 = arith.constant 0 : index
      %56 = vector.load %arg6[%c0_31, %c0_32] : memref<8x32xf32, #tpu.memory_space<vmem>>, vector<8x32xf32>
      tpu.vector_store %arg6[%c0_31, %c0_32], %55 {strides = array<i32>} : memref<8x32xf32, #tpu.memory_space<vmem>>, vector<8x32xf32>,
      %c0_33 = arith.constant 0 : index
      %c0_34 = arith.constant 0 : index
      %57 = vector.load %arg7[%c0_33, %c0_34] : memref<8x32xf32, #tpu.memory_space<vmem>>, vector<8x32xf32>
      tpu.vector_store %arg7[%c0_33, %c0_34], %55 {strides = array<i32>} : memref<8x32xf32, #tpu.memory_space<vmem>>, vector<8x32xf32>,
    } else {
    }
    %c0 = arith.constant 0 : index
    %c0_1 = arith.constant 0 : index
    %3 = vector.load %arg6[%c0, %c0_1] : memref<8x32xf32, #tpu.memory_space<vmem>>, vector<8x32xf32>
    %c0_2 = arith.constant 0 : index
    %c0_3 = arith.constant 0 : index
    %4 = vector.load %arg7[%c0_2, %c0_3] : memref<8x32xf32, #tpu.memory_space<vmem>>, vector<8x32xf32>
    %c0_4 = arith.constant 0 : index
    %c0_5 = arith.constant 0 : index
    %c0_6 = arith.constant 0 : index
    %c0_7 = arith.constant 0 : index
    %5 = vector.load %arg3[%c0_4, %c0_5, %c0_6, %c0_7] : memref<1x2x32x32xbf16, #tpu.memory_space<vmem>>, vector<1x1x32x32xbf16>
    %6 = vector.shape_cast %5 : vector<1x1x32x32xbf16> to vector<32x32xbf16>
    %c0_8 = arith.constant 0 : index
    %c1 = arith.constant 1 : index
    %c0_9 = arith.constant 0 : index
    %c0_10 = arith.constant 0 : index
    %7 = vector.load %arg3[%c0_8, %c1, %c0_9, %c0_10] : memref<1x2x32x32xbf16, #tpu.memory_space<vmem>>, vector<1x1x32x32xbf16>
    %8 = vector.shape_cast %7 : vector<1x1x32x32xbf16> to vector<32x32xbf16>
    %c0_11 = arith.constant 0 : index
    %c0_12 = arith.constant 0 : index
    %c0_13 = arith.constant 0 : index
    %9 = vector.load %arg4[%c0_11, %c0_12, %c0_13] : memref<1x2x32xf32, #tpu.memory_space<vmem>>, vector<1x1x32xf32>
    %10 = vector.shape_cast %9 : vector<1x1x32xf32> to vector<1x32xf32>
    %c0_14 = arith.constant 0 : index
    %c1_15 = arith.constant 1 : index
    %c0_16 = arith.constant 0 : index
    %11 = vector.load %arg4[%c0_14, %c1_15, %c0_16] : memref<1x2x32xf32, #tpu.memory_space<vmem>>, vector<1x1x32xf32>
    %12 = vector.shape_cast %11 : vector<1x1x32xf32> to vector<1x32xf32>
    %13 = arith.truncf %4 : vector<8x32xf32> to vector<8x32xbf16>
    %cst = arith.constant dense<0.000000e+00> : vector<8x32xf32>
    %14 = tpu.matmul %13, %6, %cst {dimension_numbers = #tpu.dot_dimension_numbers<[1], [0], [0], [1], [0, 0, 1, 1], [], []>} : vector<8x32xbf16>, vector<32x32xbf16>, vector<8x32xf32> -> vector<8x32xf32>
    %15 = vector.broadcast %10 : vector<1x32xf32> to vector<8x32xf32>
    %16 = arith.addf %14, %15 : vector<8x32xf32>
    %cst_17 = arith.constant 5.000000e-01 : f32
    %17 = vector.broadcast %cst_17 : f32 to vector<8x32xf32>
    %18 = arith.mulf %17, %16 : vector<8x32xf32>
    %cst_18 = arith.constant 4.471500e-02 : f32
    %19 = vector.broadcast %cst_18 : f32 to vector<8x32xf32>
    %20 = arith.mulf %19, %16 : vector<8x32xf32>
    %21 = arith.mulf %20, %16 : vector<8x32xf32>
    %22 = arith.mulf %21, %16 : vector<8x32xf32>
    %23 = arith.addf %16, %22 : vector<8x32xf32>
    %cst_19 = arith.constant 0.797884583 : f32
    %24 = vector.broadcast %cst_19 : f32 to vector<8x32xf32>
    %25 = arith.mulf %24, %23 : vector<8x32xf32>
    %26 = math.tanh %25 : vector<8x32xf32>
    %cst_20 = arith.constant 1.000000e+00 : f32
    %27 = vector.broadcast %cst_20 : f32 to vector<8x32xf32>
    %28 = arith.addf %27, %26 : vector<8x32xf32>
    %29 = arith.mulf %18, %28 : vector<8x32xf32>
    %30 = arith.addf %3, %29 : vector<8x32xf32>
    %31 = arith.truncf %30 : vector<8x32xf32> to vector<8x32xbf16>
    %cst_21 = arith.constant dense<0.000000e+00> : vector<8x32xf32>
    %32 = tpu.matmul %31, %8, %cst_21 {dimension_numbers = #tpu.dot_dimension_numbers<[1], [0], [0], [1], [0, 0, 1, 1], [], []>} : vector<8x32xbf16>, vector<32x32xbf16>, vector<8x32xf32> -> vector<8x32xf32>
    %33 = vector.broadcast %12 : vector<1x32xf32> to vector<8x32xf32>
    %34 = arith.addf %32, %33 : vector<8x32xf32>
    %cst_22 = arith.constant 5.000000e-01 : f32
    %35 = vector.broadcast %cst_22 : f32 to vector<8x32xf32>
    %36 = arith.mulf %35, %34 : vector<8x32xf32>
    %cst_23 = arith.constant 4.471500e-02 : f32
    %37 = vector.broadcast %cst_23 : f32 to vector<8x32xf32>
    %38 = arith.mulf %37, %34 : vector<8x32xf32>
    %39 = arith.mulf %38, %34 : vector<8x32xf32>
    %40 = arith.mulf %39, %34 : vector<8x32xf32>
    %41 = arith.addf %34, %40 : vector<8x32xf32>
    %cst_24 = arith.constant 0.797884583 : f32
    %42 = vector.broadcast %cst_24 : f32 to vector<8x32xf32>
    %43 = arith.mulf %42, %41 : vector<8x32xf32>
    %44 = math.tanh %43 : vector<8x32xf32>
    %cst_25 = arith.constant 1.000000e+00 : f32
    %45 = vector.broadcast %cst_25 : f32 to vector<8x32xf32>
    %46 = arith.addf %45, %44 : vector<8x32xf32>
    %47 = arith.mulf %36, %46 : vector<8x32xf32>
    %48 = arith.addf %4, %47 : vector<8x32xf32>
    %c1_i32 = arith.constant 1 : i32
    %49 = arith.cmpi ne, %arg1, %c1_i32 : i32
    %50 = arith.extui %49 : i1 to i32
    %c0_i32_26 = arith.constant 0 : i32
    %51 = arith.cmpi ne, %50, %c0_i32_26 : i32
    scf.if %51 {
      %c0_29 = arith.constant 0 : index
      %c0_30 = arith.constant 0 : index
      %55 = vector.load %arg6[%c0_29, %c0_30] : memref<8x32xf32, #tpu.memory_space<vmem>>, vector<8x32xf32>
      tpu.vector_store %arg6[%c0_29, %c0_30], %30 {strides = array<i32>} : memref<8x32xf32, #tpu.memory_space<vmem>>, vector<8x32xf32>,
      %c0_31 = arith.constant 0 : index
      %c0_32 = arith.constant 0 : index
      %56 = vector.load %arg7[%c0_31, %c0_32] : memref<8x32xf32, #tpu.memory_space<vmem>>, vector<8x32xf32>
      tpu.vector_store %arg7[%c0_31, %c0_32], %48 {strides = array<i32>} : memref<8x32xf32, #tpu.memory_space<vmem>>, vector<8x32xf32>,
    } else {
    }
    %c1_i32_27 = arith.constant 1 : i32
    %52 = arith.cmpi eq, %arg1, %c1_i32_27 : i32
    %53 = arith.extui %52 : i1 to i32
    %c0_i32_28 = arith.constant 0 : i32
    %54 = arith.cmpi ne, %53, %c0_i32_28 : i32
    scf.if %54 {
      %55 = arith.addf %30, %48 : vector<8x32xf32>
      %c0_29 = arith.constant 0 : index
      %c0_30 = arith.constant 0 : index
      %56 = vector.load %arg5[%c0_29, %c0_30] : memref<8x32xf32, #tpu.memory_space<vmem>>, vector<8x32xf32>
      tpu.vector_store %arg5[%c0_29, %c0_30], %55 {strides = array<i32>} : memref<8x32xf32, #tpu.memory_space<vmem>>, vector<8x32xf32>,
    } else {
    }
    return
  }
  func.func @transform_0(%arg0: i32, %arg1: i32) -> (i32, i32) {
    %c0_i32 = arith.constant 0 : i32
    %c0_i32_0 = arith.constant 0 : i32
    return %arg0, %c0_i32 : i32, i32
  }
  func.func @transform_1(%arg0: i32, %arg1: i32) -> (i32, i32, i32, i32) {
    %c0_i32 = arith.constant 0 : i32
    %c0_i32_0 = arith.constant 0 : i32
    %c0_i32_1 = arith.constant 0 : i32
    %c0_i32_2 = arith.constant 0 : i32
    return %arg1, %c0_i32, %c0_i32_0, %c0_i32_1 : i32, i32, i32, i32
  }
  func.func @transform_2(%arg0: i32, %arg1: i32) -> (i32, i32, i32) {
    %c0_i32 = arith.constant 0 : i32
    %c0_i32_0 = arith.constant 0 : i32
    %c0_i32_1 = arith.constant 0 : i32
    return %arg1, %c0_i32, %c0_i32_0 : i32, i32, i32
  }
  func.func @transform_3(%arg0: i32, %arg1: i32) -> (i32, i32) {
    %c0_i32 = arith.constant 0 : i32
    %c0_i32_0 = arith.constant 0 : i32
    return %arg0, %c0_i32 : i32, i32
  }
}

</mosaic_0001>

<bundles_post_ra>
// kernel: reversible_sequence.1
= control target key start
LH: loop header
LB: loop body
LE: loop exit
PB: predicated region body
PF: predicated region fallthrough
CT: control target
= control target key end

     0   :  { %8 = vsyncpa [#allocation5], 0  ;;  %s898_s0 = inlined_call_operand.vmem [shape: f32[16,32], index: 0, kind: input, shape index: {}]   ;;  %s899_s1 = inlined_call_operand.vmem [shape: bf16[2,2,32,32], index: 1, kind: input, shape index: {}]   ;;  %s900_s2 = inlined_call_operand.vmem [shape: f32[2,2,32], index: 2, kind: input, shape index: {}]   ;;  %s901_s3 = inlined_call_operand.hbm [shape: f32[16,32], index: 3, kind: output, shape index: {}]  }
   0x1   :  { %10 = vsyncpa [#allocation5 + $0x1], 0  ;;  %s748_s12 = smov 0   ;;  %s750_s13 = smov 0  }
   0x2   :  { %s752_s14 = smov 0   ;;  %s754_s15 = smov 0  }
   0x3   :  { %s756_s16 = smov 0   ;;  %s758_s17 = smov 0  }
   0x4   :  { %s760_s18 = smov 0   ;;  %s762_s19 = smov 0  }
   0x5 LB: > { %s498_s20 = sadd.s32 4294967295, %s723_s19   ;;  %s499_s21 = sadd.s32 4294967294, %s723_s19   ;;  %s723_s19 = sphi %s762_s19, %s16_s19   ;;  %s719_s18 = sphi %s760_s18, %s917_s18   ;;  %s715_s17 = sphi %s758_s17, %s916_s17   ;;  %s711_s16 = sphi %s756_s16, %s915_s16   ;;  %s707_s15 = sphi %s754_s15, %s914_s15   ;;  %s703_s14 = sphi %s752_s14, %s913_s14   ;;  %s699_s13 = sphi %s750_s13, %s912_s13   ;;  %s695_s12 = sphi %s748_s12, %s911_s12  }
   0x6   : > { %s25_s22 = sadd.s32 1, %s715_s17  ;;  %s28_s23 = sadd.s32 1, %s719_s18 }
   0x7   : > { %p26_p0 = scmp.ge.s32.totalorder %s25_s22, 2  ;;  %p123_p1 = scmp.ne.s32.totalorder %s703_s14, %s699_s13 }
   0x8   : > { %p124_p2 = scmp.eq.s32.totalorder %s498_s20, 3  ;;  %p129_p4 = scmp.ne.s32.totalorder %s699_s13, %s695_s12 }
   0x9   : > { %s919_s22 = smov (%p26_p0, %s25_s22), 0  ;;  %s921_s23 = smov (!%p26_p0, %s28_s23), %s719_s18 }
   0xa   : > { %904 = sst [smem:[#allocation7_spill]] %s919_s22  ;;  %p797_p3 = por %p124_p2, %p123_p1 }
   0xb   : > { %p30_p5 = scmp.ge.s32.totalorder %s921_s23, 2  ;;  %p130_p6 = scmp.eq.s32.totalorder %s499_s21, 3 }
   0xc   : > { %p502_p7 = scmp.ge.s32.totalorder %s723_s19, 1  ;;  %p170_p8 = scmp.lt.s32.totalorder %s723_s19, 5 }
   0xd   : > { %s923_s23 = smov (%p30_p5, %s921_s23), 0  ;;  %p807_p9 = por %p130_p6, %p129_p4 }
   0xe   : > { %906 = sst [smem:[#allocation8_spill]] %s923_s23  ;;  %p171_p10 = pnand %p502_p7, %p170_p8 }
   0xf   : > { %s110_s26 = ssub.s32 %s719_s18, %s923_s23  ;;  %s113_s27 = sadd.s32 1, %s703_s14 }
  0x10   : > { %p111_p11 = scmp.eq.s32.totalorder %s110_s26, 0  ;;  %174 = sbr.rel (%p171_p10) target bundleno = 526 (0x20e), region = 32 }
  0x11   : > { %s903_s29 = sand.u32 (!%p171_p10), 1, %s699_s13   ;;  %p202_p12 = scmp.lt.s32.totalorder (!%p171_p10), %s711_s16, 1 }
  0x12   : > { %s815_s28 = scalar_select %p111_p11, %s703_s14, %s113_s27  }
  0x13   : > { %s821_s30 = sshll.u32 (!%p171_p10), %s903_s29, 3  ;;  %p206_p13 = scmp.lt.s32.totalorder (!%p171_p10), %s707_s15, 1 }
  0x14   : > { %s201_s22 = scalar_lea.vmem (!%p171_p10), [#allocation4], %s821_s30  ;;  %p508_p0 = scmp.ne.s32.totalorder (!%p171_p10), %s707_s15, 0 }
  0x15   : > { %s203_s4 = scalar_select %p202_p12, %s711_s16, 1 }
  0x16   : > { %s207_s5 = scalar_select %p206_p13, %s707_s15, 1 }
  0x17   : > { %s504_s6 = sshll.u32 %s203_s4, 3  ;;  %219 = sbr.rel (%p508_p0) target bundleno = 30 (0x1e), region = 36 }
  0x18   : > { %s205_s9 = scalar_lea.vmem %s898_s0, %s504_s6  ;;  %s527_s10 = sshll.u32 %s207_s5, 5 }
  0x19   : > { %s210_s21 = scalar_lea.vmem %s899_s1, %s527_s10  ;;  %s507_s26 = sshll.u32 %s207_s5, 1 }
  0x1a   : > { %s835_s29 = scalar_lea.vmem %s900_s2, %s507_s26 }
  0x1c   : > { %v220_v0 = vld [vmem:[%s205_s9] sm:$0xff]  ;;  %vm221_vm0 = vcmask 261120  }
  0x1d   : > { %222 = vst.msk [vmem:[#allocation2] sm:$0xff] %vm221_vm0, %v220_v0  ;;  %223 = vst.msk [vmem:[#allocation3] sm:$0xff] %vm221_vm0, %v220_v0 }
  0x1e PF: > { %v623_v1 = vld [vmem:[%s210_s21 + $0x8] sm:$0xff]   ;;  %v725_v2 = vmov 0.0   ;;  %v624_v3 = vld [vmem:[%s210_s21] sm:$0xff]   ;;  %vm726_vm1 = vmmov 0   ;;  %vm254_vm2 = vcmask 261120   ;;  %v625_v6 = vld [vmem:[%s210_s21 + $0x18] sm:$0xff]  }
  0x1f   : > { %534 = vmatprep.subr.bf16.mxu0 %v725_v2  ;;  %542 = vmatprep.subr.bf16.mxu1 %v725_v2  ;;  %v626_v7 = vld [vmem:[%s210_s21 + $0x10] sm:$0xff]   ;;  %v513_v8 = vld [vmem:[%s835_s29] ss:$0 sm:$0xff]  ;;  %v517_v26 = vld [vmem:[%s835_s29 + $0x1] ss:$0 sm:$0xff]  ;;  %p521_p1 = scmp.eq.s32.totalorder %s707_s15, 1 }
  0x20   : > { %535 = vmatpush3.bf16.msra.mxu0 %v623_v1  ;;  %538 = vmatprep.mubr.msk.bf16.mxu0 %vm726_vm1, %v725_v2 }
  0x21   : > { %536 = vmatprep.subr.bf16.mxu0 %v725_v2  ;;  %546 = vmatprep.mubr.msk.bf16.mxu1 %vm726_vm1, %v725_v2 }
  0x22   : > { %543 = vmatpush3.bf16.msra.mxu1 %v625_v6 }
  0x23   : > { %544 = vmatprep.subr.bf16.mxu1 %v725_v2 }
  0x24   : > { %v225_v4 = vld [vmem:[#allocation3] sm:$0xff]  ;;  %537 = vmatpush3.bf16.msra.mxu0 %v624_v3  ;;  %v224_v22 = vld [vmem:[#allocation2] sm:$0xff] }
  0x25   : > { %v237_v5 = vpack.c.bf16 %v225_v4, %v225_v4 }
  0x26   : > { %545 = vmatpush3.bf16.msra.mxu1 %v626_v7 }
  0x27   : > { %539 = vmatmul.mubr.msk.bf16.vlgmr.msra.gmra.mxu0 %vm254_vm2, %v237_v5 }
  0xe7   : > { %v292_v9 = vpop.f32.mrf.mxu0 }
  0xe8   : > { %v293_v10 = vadd.f32 %v513_v8, %v292_v9 }
  0xe9   : > { %v540_v11 = vpop.f32.mrf.mxu0 }
  0xea   : > { %v299_v12 = vmul.f32 0.044715, %v293_v10  ;;  %v298_v20 = vmul.f32 0.5, %v293_v10 }
  0xeb   : > { %v295_v13 = vpop.f32.mrf.mxu0 }
  0xec   : > { %v300_v14 = vmul.f32 %v299_v12, %v293_v10 }
  0xed   : > { %v541_v15 = vpop.f32.mrf.mxu0 }
  0xee   : > { %v301_v16 = vmul.f32 %v300_v14, %v293_v10 }
  0xf0   : > { %v302_v17 = vadd.f32 %v301_v16, %v293_v10 }
  0xf2   : > { %v303_v18 = vmul.f32 0.7978846, %v302_v17 }
  0xf4   : > { %627 = vtanh.f32 %v303_v18 }
 0x101   : > { %v628_v19 = vpop.eup %627 }
 0x102   : > { %v305_v21 = vadd.f32 1.0, %v628_v19 }
 0x104   : > { %v306_v23 = vmul.f32 %v305_v21, %v298_v20 }
 0x106   : > { %v307_v24 = vadd.f32 %v306_v23, %v224_v22 }
 0x108   : > { %v308_v25 = vpack.c.bf16 %v307_v24, %v307_v24 }
 0x10a   : > { %547 = vmatmul.mubr.msk.bf16.vlgmr.msra.gmra.mxu1 %vm254_vm2, %v308_v25 }
 0x1ca   : > { %v362_v27 = vpop.f32.mrf.mxu1 }
 0x1cb   : > { %v363_v28 = vadd.f32 %v517_v26, %v362_v27 }
 0x1cc   : > { %v548_v29 = vpop.f32.mrf.mxu1 }
 0x1cd   : > { %v369_v30 = vmul.f32 0.044715, %v363_v28  ;;  %v368_v38 = vmul.f32 0.5, %v363_v28 }
 0x1ce   : > { %v365_v31 = vpop.f32.mrf.mxu1 }
 0x1cf   : > { %v370_v32 = vmul.f32 %v369_v30, %v363_v28 }
 0x1d0   : > { %v549_v33 = vpop.f32.mrf.mxu1 }
 0x1d1   : > { %v371_v34 = vmul.f32 %v370_v32, %v363_v28 }
 0x1d3   : > { %v372_v35 = vadd.f32 %v371_v34, %v363_v28 }
 0x1d5   : > { %v373_v36 = vmul.f32 0.7978846, %v372_v35 }
 0x1d7   : > { %629 = vtanh.f32 %v373_v36 }
 0x1e4   : > { %v630_v37 = vpop.eup %629 }
 0x1e5   : > { %v375_v39 = vadd.f32 1.0, %v630_v37  ;;  %381 = sbr.rel (%p521_p1) target bundleno = 492 (0x1ec), region = 40 }
 0x1e7   : > { %v376_v40 = vmul.f32 %v375_v39, %v368_v38 }
 0x1e9   : > { %v377_v41 = vadd.f32 %v376_v40, %v225_v4 }
 0x1ea   : > { %382 = vst.msk [vmem:[#allocation2] sm:$0xff] %vm254_vm2, %v307_v24 }
 0x1eb   : > { %383 = vst.msk [vmem:[#allocation3] sm:$0xff] %vm254_vm2, %v377_v41 }
 0x1ec PF: > { %p522_p2 = scmp.ne.s32.totalorder %s707_s15, 1 }
 0x1ee   : > { %387 = sbr.rel (%p522_p2) target bundleno = 502 (0x1f6), region = 44 }
 0x1f3   : > { %v388_v42 = vadd.f32 %v377_v41, %v307_v24 }
 0x1f5   : > { %389 = vst.msk [vmem:[%s201_s22] sm:$0xff] %vm254_vm2, %v388_v42 }
 0x1f6 PF: > { %s524_s23 = sshll.u32 %s711_s16, 7  ;;  %s404_s6 = sshll.u32 %s201_s22, 4  ;;  %s405_s6 = int_to_ptr.vmem [resolvable:$true] %s404_s6 }
 0x1f7   : > { %s402_s5 = scalar_lea.hbm %s901_s3, %s524_s23  ;;  %s908_s15 = sand.u32 1, %s699_s13  }
 0x1f8   : > { %s391_s7 = scalar_lea.sflag [#allocation5], %s908_s15  ;;  %s631_s8 = scalar_lea.vmem %s405_s6, 128 }
 0x1f9   : > { %p632_p4 = scmp.ne.s32.totalorder %s405_s6, %s631_s8  ;;  %s727_s9 = smov [#allocation4]  }
 0x1fa   : > { %s635_s10 = sshll.u32 %s727_s9, 4  ;;  %s636_s10 = int_to_ptr.vmem [resolvable:$false] %s635_s10 }
 0x1fb   : > { %p633_p5 = pnand %p632_p4, %p797_p3  ;;  %s637_s11 = scalar_lea.vmem %s636_s10, 256 }
 0x1fc   : > { %p638_p7 = scmp.lt.s32.totalorder %s405_s6, %s636_s10  ;;  %p639_p8 = scmp.lt.s32.totalorder %s637_s11, %s631_s8 }
 0x1fd   : > { %p634_p6 = pneg %p633_p5 }
 0x1fe   : > { %p640_p10 = por %p639_p8, %p638_p7 }
 0x200   : > { %p641_p11 = pnand %p640_p10, %p634_p6 }
 0x202   : > { %644 = shalt.err (!%p641_p11)
}
 0x203   : > { %s645_s16 = scalar_lea.hbm %s402_s5, 128  ;;  %s649_s20 = scalar_lea.hbm %s901_s3, 256 }
 0x204   : > { %p646_p12 = scmp.ne.s32.totalorder %s402_s5, %s645_s16  ;;  %p650_p1 = scmp.lt.s32.totalorder %s402_s5, %s901_s3 }
 0x205   : > { %p651_p2 = scmp.lt.s32.totalorder %s649_s20, %s645_s16 }
 0x206   : > { %p647_p13 = pnand %p646_p12, %p797_p3 }
 0x207   : > { %p652_p4 = por %p651_p2, %p650_p1 }
 0x208   : > { %p648_p0 = pneg %p647_p13 }
 0x20a   : > { %p653_p5 = pnand %p652_p4, %p648_p0 }
 0x20c   : > { %656 = shalt.err (!%p653_p5)
}
 0x20d   : > { %550 = dma.vmem_to_hbm [thread:$0]  (%p797_p3), %s405_s6, 128, %s402_s5, %s391_s7  }
 0x20e PF: > { %p556_p6 = scmp.ge.s32.totalorder %s723_s19, 2  ;;  %s416_s27 = sand.u32 1, %s695_s12  }
 0x20f   : > { %s417_s23 = scalar_lea.sflag [#allocation5], %s416_s27 }
 0x210   : > { %p553_p7 = pnand %p556_p6, %p807_p9 }
 0x212   : > { %p554_p8 = pneg %p553_p7 }
 0x214   : > { %690 = dma.done.wait (%p554_p8), %s417_s23, 128  }
 0x215   : > { %692 = vsyncadd (%p554_p8), %s417_s23, 4294967168  ;;  %s16_s19 = sadd.s32 1, %s723_s19   ;;  %s909_s24 = sld [smem:[#allocation7_spill]] }
 0x216   : > { %p13_p10 = scmp.ge.s32.totalorder %s16_s19, 6   ;;  %s910_s29 = sld [smem:[#allocation8_spill]] }
 0x217   : > { %s911_s12 = smov %s699_s13  ;;  %s912_s13 = smov %s703_s14 }
 0x218   : > { %s913_s14 = smov %s815_s28  ;;  %s914_s15 = smov %s715_s17 }
 0x219   : > { %s915_s16 = smov %s719_s18  ;;  %15 = sbr.rel (!%p13_p10) target bundleno = 5 (0x5), region = 86 }
 0x21b   : > { %s916_s17 = smov %s909_s24 }
 0x21c   : > { %s917_s18 = smov %s910_s29 }
 0x21e   :  { %422 = vsyncpa [#allocation5], 1 }
 0x21f   :  { %424 = vsyncpa [#allocation5 + $0x1], 1 }

</bundles_post_ra>
